<compile_context>
chip_gen: v7x
topology: tpu7x:2x2x1
jax: 0.10.0
libtpu: 0.0.40
codegen_flags: <defaults>
</compile_context>

<pallas_src>
import functools

import jax
import jax.numpy as jnp
from jax.experimental import pallas as pl
from jax.experimental.pallas import tpu as pltpu

_LANES = 128
_ROW_ALIGN = {4: 8, 2: 16, 1: 32}   # sublane tile: f32 / bf16,f16 / int8


def _tversky_kernel(x_ref, t_ref, out_ref, acc_ref, *,
                    valid_rows, tiles_per_core, maybe_partial):
    c = pl.program_id(0)            # core split ("parallel"; size 1 off-v7x)
    i = pl.program_id(1)            # reduction over row tiles ("arbitrary")

    @pl.when(i == 0)
    def _():
        acc_ref[...] = jnp.zeros_like(acc_ref)

    rows, lanes = x_ref.shape
    x = x_ref[...].astype(jnp.float32)
    t = t_ref[...].astype(jnp.float32)
    # Single-EUP sigmoid: sigmoid(x) == 0.5 * (tanh(0.5*x) + 1).
    p = 0.5 * (jnp.tanh(0.5 * x) + 1.0)

    def accumulate(pv, tv):
        # Keep 8 sublanes live per partial sum (pure VALU vreg adds); the
        # sublane and lane collapse is deferred to the wrapper.
        acc_ref[0] += jnp.sum((pv * tv).reshape(-1, 8, lanes), axis=0)   # TP
        acc_ref[1] += jnp.sum(pv.reshape(-1, 8, lanes), axis=0)          # sum p
        acc_ref[2] += jnp.sum(tv.reshape(-1, 8, lanes), axis=0)          # sum t

    if not maybe_partial:
        accumulate(p, t)                        # grid exactly tiles the rows
    else:
        base_row = (c * tiles_per_core + i) * rows
        is_boundary = base_row + rows > valid_rows

        @pl.when(jnp.logical_not(is_boundary))
        def _():                                # interior fast path: no mask
            accumulate(p, t)

        @pl.when(is_boundary)
        def _():                                # single row-partial last tile
            row_ids = jax.lax.broadcasted_iota(jnp.int32, (rows, lanes), 0)
            valid = (base_row + row_ids) < valid_rows
            accumulate(jnp.where(valid, p, 0.0), jnp.where(valid, t, 0.0))

    @pl.when(i == pl.num_programs(1) - 1)
    def _():
        out_ref[...] = acc_ref[...].reshape(out_ref.shape)


@functools.lru_cache(maxsize=None)
def _detect_num_cores():
    # The 2-way core split only pays off on v7x (2 TensorCores per chip);
    # on v5e/v6e the leading grid axis would just be a serial loop.
    try:
        kind = jax.devices()[0].device_kind.lower()
    except Exception:
        return 1
    return 2 if "v7" in kind else 1


def _input_spec(tile_rows, index_map, tiles_per_core):
    if tiles_per_core >= 3:
        try:    # 3-deep input buffering hides DMA-issue jitter on the stream
            return pl.BlockSpec((tile_rows, _LANES), index_map,
                                pipeline_mode=pl.Buffered(3))
        except TypeError:                       # older jax: no pipeline_mode
            pass
    return pl.BlockSpec((tile_rows, _LANES), index_map)


def tversky_loss(inputs, targets, alpha=0.5, beta=0.5, smooth=1.0,
                 tile_rows=2048):
    """1 - Tversky index of sigmoid(inputs) vs targets (both flattened)."""
    lanes = _LANES
    x = inputs.reshape(-1)
    t = targets.reshape(-1)
    if t.dtype == jnp.bool_:
        t = t.astype(jnp.int8)                  # 1-byte targets, Mosaic-friendly
    n = x.shape[0]

    # Sublane alignment of the (rows, 128) blocks for the narrowest streamed
    # dtype: 8 rows (32-bit), 16 (16-bit), 32 (8-bit).
    itemsize = min(x.dtype.itemsize, t.dtype.itemsize)
    row_align = _ROW_ALIGN.get(itemsize, 8)

    m = n // lanes
    if m < row_align:                           # too small for a kernel launch
        m = 0
    n_main = m * lanes

    tp = jnp.float32(0.0)
    sum_p = jnp.float32(0.0)
    sum_t = jnp.float32(0.0)

    if n_main < n:
        # <128-element lane tail (or an entire tiny input): plain JAX.  No
        # padded copy of the big arrays is ever materialized.
        xt = x[n_main:].astype(jnp.float32)
        tt = t[n_main:].astype(jnp.float32)
        pt = jax.nn.sigmoid(xt)
        tp = tp + jnp.sum(pt * tt)
        sum_p = sum_p + jnp.sum(pt)
        sum_t = sum_t + jnp.sum(tt)

    if m > 0:
        x2 = (x[:n_main] if n_main < n else x).reshape(m, lanes)
        t2 = (t[:n_main] if n_main < n else t).reshape(m, lanes)

        # Tile rows: as large as allowed (default 2048 -> 1 MiB f32 / buffer),
        # rounded down to the sublane alignment so interior tiles never need a
        # mask.  (v6e may bump tile_rows to 4096; keep <=2048 on v5e unless
        # vmem_limit_bytes is raised.)
        tr = max(row_align, (min(tile_rows, m) // row_align) * row_align)
        num_tiles = pl.cdiv(m, tr)

        num_cores = _detect_num_cores()
        if num_cores > 1 and (num_tiles < num_cores or num_tiles % num_cores):
            num_cores = 1                       # never DMA a fully-OOB tile
        tiles_per_core = num_tiles // num_cores

        maybe_partial = (num_tiles * tr) != m   # only then is any mask traced

        def in_map(c, i):
            return (c * tiles_per_core + i, 0)

        kernel = functools.partial(
            _tversky_kernel, valid_rows=m, tiles_per_core=tiles_per_core,
            maybe_partial=maybe_partial)

        cost = pl.CostEstimate(
            flops=6 * n_main,
            transcendentals=n_main,
            bytes_accessed=n_main * (x2.dtype.itemsize + t2.dtype.itemsize)
            + num_cores * 3 * 8 * lanes * 4)

        partials = pl.pallas_call(
            kernel,
            out_shape=jax.ShapeDtypeStruct((num_cores, 3, 8, lanes),
                                           jnp.float32),
            grid_spec=pltpu.PrefetchScalarGridSpec(
                num_scalar_prefetch=0,
                grid=(num_cores, tiles_per_core),
                in_specs=[_input_spec(tr, in_map, tiles_per_core),
                          _input_spec(tr, in_map, tiles_per_core)],
                out_specs=pl.BlockSpec((1, 3, 8, lanes),
                                       lambda c, i: (c, 0, 0, 0)),
                scratch_shapes=[pltpu.VMEM((3, 8, lanes), jnp.float32)],
            ),
            compiler_params=pltpu.CompilerParams(
                dimension_semantics=("parallel", "arbitrary")),
            cost_estimate=cost,
        )(x2, t2)

        sums = jnp.sum(partials, axis=(0, 2, 3))   # (3,) = [TP, sum_p, sum_t]
        tp = tp + sums[0]
        sum_p = sum_p + sums[1]
        sum_t = sum_t + sums[2]

    fp = sum_p - tp
    fn = sum_t - tp
    tversky = (tp + smooth) / (tp + alpha * fp + beta * fn + smooth)
    return 1.0 - tversky


def _reference_tversky(inputs, targets, alpha=0.5, beta=0.5, smooth=1.0):
    p = jax.nn.sigmoid(inputs.reshape(-1).astype(jnp.float32))
    t = targets.reshape(-1).astype(jnp.float32)
    tp = jnp.sum(p * t)
    fp = jnp.sum((1.0 - t) * p)
    fn = jnp.sum(t * (1.0 - p))
    return 1.0 - (tp + smooth) / (tp + alpha * fp + beta * fn + smooth)


if __name__ == "__main__":
    key = jax.random.PRNGKey(0)
    k1, k2, k3, k4, k5, k6 = jax.random.split(key, 6)

    # 1) f32 NCHW logits / binary targets, lane-aligned count (2048 elements).
    x1 = jax.random.normal(k1, (2, 4, 16, 16), dtype=jnp.float32)
    t1 = (jax.random.uniform(k2, (2, 4, 16, 16)) > 0.5).astype(jnp.float32)
    l1 = jax.block_until_ready(tversky_loss(x1, t1, alpha=0.5, beta=0.5, smooth=1.0))
    r1 = _reference_tversky(x1, t1, alpha=0.5, beta=0.5, smooth=1.0)
    assert jnp.allclose(l1, r1, atol=1e-5, rtol=1e-5), (l1, r1)

    # 2) Unaligned count (1*3*17*23 = 1173): exercises the plain-JAX lane-tail
    #    fold plus the masked row-partial boundary tile (2 row tiles).
    x2 = jax.random.normal(k3, (1, 3, 17, 23), dtype=jnp.float32)
    t2 = (jax.random.uniform(k4, (1, 3, 17, 23)) > 0.5).astype(jnp.float32)
    l2 = jax.block_until_ready(tversky_loss(x2, t2, alpha=0.7, beta=0.3, smooth=1.0))
    r2 = _reference_tversky(x2, t2, alpha=0.7, beta=0.3, smooth=1.0)
    assert jnp.allclose(l2, r2, atol=1e-5, rtol=1e-5), (l2, r2)

    # 3) Narrow dtypes streamed straight into the kernel: bf16 logits + int8
    #    targets (16384 elements = 128 aligned rows, unmasked fast path).
    x3 = jax.random.normal(k5, (2, 4, 32, 64), dtype=jnp.bfloat16)
    t3 = (jax.random.uniform(k6, (2, 4, 32, 64)) > 0.5).astype(jnp.int8)
    l3 = jax.block_until_ready(tversky_loss(x3, t3, alpha=0.5, beta=0.5, smooth=1.0))
    r3 = _reference_tversky(x3, t3, alpha=0.5, beta=0.5, smooth=1.0)
    assert jnp.allclose(l3, r3, atol=1e-4, rtol=1e-4), (l3, r3)

    print("KERNEL_OK")
</pallas_src>

<mosaic_0001>
module attributes {stable_mosaic.version = 11 : i64} {
  func.func @_tversky_kernel(%arg0: i32, %arg1: i32, %arg2: memref<16x128xf32, #tpu.memory_space<vmem>>, %arg3: memref<16x128xf32, #tpu.memory_space<vmem>>, %arg4: memref<1x3x8x128xf32, #tpu.memory_space<vmem>>, %arg5: memref<3x8x128xf32, #tpu.memory_space<vmem>>) attributes {dimension_semantics = [#tpu.dimension_semantics<parallel>, #tpu.dimension_semantics<arbitrary>], iteration_bounds = array<i64: 1, 1>, scalar_prefetch = 0 : i64, scratch_operands = 1 : i64, tpu.core_type = #tpu.core_type<tc>, window_params = [{transform_indices = @transform_0, window_bounds = array<i64: 16, 128>}, {transform_indices = @transform_1, window_bounds = array<i64: 16, 128>}, {transform_indices = @transform_2, window_bounds = array<i64: 1, 3, 8, 128>}]} {
    %c0_i32 = arith.constant 0 : i32
    %0 = arith.cmpi eq, %arg1, %c0_i32 : i32
    %1 = arith.extui %0 : i1 to i32
    %c0_i32_0 = arith.constant 0 : i32
    %2 = arith.cmpi ne, %1, %c0_i32_0 : i32
    scf.if %2 {
      %cst_27 = arith.constant 0.000000e+00 : f32
      %40 = vector.broadcast %cst_27 : f32 to vector<3x8x128xf32>
      %c0_28 = arith.constant 0 : index
      %c0_29 = arith.constant 0 : index
      %c0_30 = arith.constant 0 : index
      %41 = vector.load %arg5[%c0_28, %c0_29, %c0_30] : memref<3x8x128xf32, #tpu.memory_space<vmem>>, vector<3x8x128xf32>
      tpu.vector_store %arg5[%c0_28, %c0_29, %c0_30], %40 {strides = array<i32>} : memref<3x8x128xf32, #tpu.memory_space<vmem>>, vector<3x8x128xf32>,
    } else {
    }
    %c0 = arith.constant 0 : index
    %c0_1 = arith.constant 0 : index
    %3 = vector.load %arg2[%c0, %c0_1] : memref<16x128xf32, #tpu.memory_space<vmem>>, vector<16x128xf32>
    %c0_2 = arith.constant 0 : index
    %c0_3 = arith.constant 0 : index
    %4 = vector.load %arg3[%c0_2, %c0_3] : memref<16x128xf32, #tpu.memory_space<vmem>>, vector<16x128xf32>
    %cst = arith.constant 5.000000e-01 : f32
    %5 = vector.broadcast %cst : f32 to vector<16x128xf32>
    %6 = arith.mulf %5, %3 : vector<16x128xf32>
    %7 = math.tanh %6 : vector<16x128xf32>
    %cst_4 = arith.constant 1.000000e+00 : f32
    %8 = vector.broadcast %cst_4 : f32 to vector<16x128xf32>
    %9 = arith.addf %7, %8 : vector<16x128xf32>
    %cst_5 = arith.constant 5.000000e-01 : f32
    %10 = vector.broadcast %cst_5 : f32 to vector<16x128xf32>
    %11 = arith.mulf %10, %9 : vector<16x128xf32>
    %c0_6 = arith.constant 0 : index
    %c0_7 = arith.constant 0 : index
    %c0_8 = arith.constant 0 : index
    %12 = vector.load %arg5[%c0_6, %c0_7, %c0_8] : memref<3x8x128xf32, #tpu.memory_space<vmem>>, vector<1x8x128xf32>
    %13 = vector.shape_cast %12 : vector<1x8x128xf32> to vector<8x128xf32>
    %14 = arith.mulf %11, %4 : vector<16x128xf32>
    %15 = vector.shape_cast %14 : vector<16x128xf32> to vector<2x8x128xf32>
    %cst_9 = arith.constant dense<0.000000e+00> : vector<8x128xf32>
    %16 = vector.multi_reduction <add>, %15, %cst_9 [0] : vector<2x8x128xf32> to vector<8x128xf32>
    %17 = arith.addf %13, %16 : vector<8x128xf32>
    %c0_10 = arith.constant 0 : index
    %c0_11 = arith.constant 0 : index
    %c0_12 = arith.constant 0 : index
    %18 = vector.load %arg5[%c0_10, %c0_11, %c0_12] : memref<3x8x128xf32, #tpu.memory_space<vmem>>, vector<1x8x128xf32>
    %19 = vector.shape_cast %18 : vector<1x8x128xf32> to vector<8x128xf32>
    %20 = vector.shape_cast %17 : vector<8x128xf32> to vector<1x8x128xf32>
    tpu.vector_store %arg5[%c0_10, %c0_11, %c0_12], %20 {strides = array<i32>} : memref<3x8x128xf32, #tpu.memory_space<vmem>>, vector<1x8x128xf32>,
    %c1 = arith.constant 1 : index
    %c0_13 = arith.constant 0 : index
    %c0_14 = arith.constant 0 : index
    %21 = vector.load %arg5[%c1, %c0_13, %c0_14] : memref<3x8x128xf32, #tpu.memory_space<vmem>>, vector<1x8x128xf32>
    %22 = vector.shape_cast %21 : vector<1x8x128xf32> to vector<8x128xf32>
    %23 = vector.shape_cast %11 : vector<16x128xf32> to vector<2x8x128xf32>
    %cst_15 = arith.constant dense<0.000000e+00> : vector<8x128xf32>
    %24 = vector.multi_reduction <add>, %23, %cst_15 [0] : vector<2x8x128xf32> to vector<8x128xf32>
    %25 = arith.addf %22, %24 : vector<8x128xf32>
    %c1_16 = arith.constant 1 : index
    %c0_17 = arith.constant 0 : index
    %c0_18 = arith.constant 0 : index
    %26 = vector.load %arg5[%c1_16, %c0_17, %c0_18] : memref<3x8x128xf32, #tpu.memory_space<vmem>>, vector<1x8x128xf32>
    %27 = vector.shape_cast %26 : vector<1x8x128xf32> to vector<8x128xf32>
    %28 = vector.shape_cast %25 : vector<8x128xf32> to vector<1x8x128xf32>
    tpu.vector_store %arg5[%c1_16, %c0_17, %c0_18], %28 {strides = array<i32>} : memref<3x8x128xf32, #tpu.memory_space<vmem>>, vector<1x8x128xf32>,
    %c2 = arith.constant 2 : index
    %c0_19 = arith.constant 0 : index
    %c0_20 = arith.constant 0 : index
    %29 = vector.load %arg5[%c2, %c0_19, %c0_20] : memref<3x8x128xf32, #tpu.memory_space<vmem>>, vector<1x8x128xf32>
    %30 = vector.shape_cast %29 : vector<1x8x128xf32> to vector<8x128xf32>
    %31 = vector.shape_cast %4 : vector<16x128xf32> to vector<2x8x128xf32>
    %cst_21 = arith.constant dense<0.000000e+00> : vector<8x128xf32>
    %32 = vector.multi_reduction <add>, %31, %cst_21 [0] : vector<2x8x128xf32> to vector<8x128xf32>
    %33 = arith.addf %30, %32 : vector<8x128xf32>
    %c2_22 = arith.constant 2 : index
    %c0_23 = arith.constant 0 : index
    %c0_24 = arith.constant 0 : index
    %34 = vector.load %arg5[%c2_22, %c0_23, %c0_24] : memref<3x8x128xf32, #tpu.memory_space<vmem>>, vector<1x8x128xf32>
    %35 = vector.shape_cast %34 : vector<1x8x128xf32> to vector<8x128xf32>
    %36 = vector.shape_cast %33 : vector<8x128xf32> to vector<1x8x128xf32>
    tpu.vector_store %arg5[%c2_22, %c0_23, %c0_24], %36 {strides = array<i32>} : memref<3x8x128xf32, #tpu.memory_space<vmem>>, vector<1x8x128xf32>,
    %c0_i32_25 = arith.constant 0 : i32
    %37 = arith.cmpi eq, %arg1, %c0_i32_25 : i32
    %38 = arith.extui %37 : i1 to i32
    %c0_i32_26 = arith.constant 0 : i32
    %39 = arith.cmpi ne, %38, %c0_i32_26 : i32
    scf.if %39 {
      %c0_27 = arith.constant 0 : index
      %c0_28 = arith.constant 0 : index
      %c0_29 = arith.constant 0 : index
      %40 = vector.load %arg5[%c0_27, %c0_28, %c0_29] : memref<3x8x128xf32, #tpu.memory_space<vmem>>, vector<3x8x128xf32>
      %41 = vector.shape_cast %40 : vector<3x8x128xf32> to vector<1x3x8x128xf32>
      %c0_30 = arith.constant 0 : index
      %c0_31 = arith.constant 0 : index
      %c0_32 = arith.constant 0 : index
      %c0_33 = arith.constant 0 : index
      %42 = vector.load %arg4[%c0_30, %c0_31, %c0_32, %c0_33] : memref<1x3x8x128xf32, #tpu.memory_space<vmem>>, vector<1x3x8x128xf32>
      tpu.vector_store %arg4[%c0_30, %c0_31, %c0_32, %c0_33], %41 {strides = array<i32>} : memref<1x3x8x128xf32, #tpu.memory_space<vmem>>, vector<1x3x8x128xf32>,
    } else {
    }
    return
  }
  func.func @transform_0(%arg0: i32, %arg1: i32) -> (i32, i32) {
    %c1_i32 = arith.constant 1 : i32
    %0 = arith.muli %arg0, %c1_i32 : i32
    %1 = arith.addi %0, %arg1 : i32
    %c0_i32 = arith.constant 0 : i32
    %c0_i32_0 = arith.constant 0 : i32
    return %1, %c0_i32 : i32, i32
  }
  func.func @transform_1(%arg0: i32, %arg1: i32) -> (i32, i32) {
    %c1_i32 = arith.constant 1 : i32
    %0 = arith.muli %arg0, %c1_i32 : i32
    %1 = arith.addi %0, %arg1 : i32
    %c0_i32 = arith.constant 0 : i32
    %c0_i32_0 = arith.constant 0 : i32
    return %1, %c0_i32 : i32, i32
  }
  func.func @transform_2(%arg0: i32, %arg1: i32) -> (i32, i32, i32, i32) {
    %c0_i32 = arith.constant 0 : i32
    %c0_i32_0 = arith.constant 0 : i32
    %c0_i32_1 = arith.constant 0 : i32
    %c0_i32_2 = arith.constant 0 : i32
    return %arg0, %c0_i32, %c0_i32_0, %c0_i32_1 : i32, i32, i32, i32
  }
}

</mosaic_0001>

<bundles_post_ra>
// kernel: tpu_custom_call.1
= control target key start
LH: loop header
LB: loop body
LE: loop exit
PB: predicated region body
PF: predicated region fallthrough
CT: control target
= control target key end

     0   :  { %7 = vsyncpa [#allocation4], 0  ;;  %s260_s0 = inlined_call_operand.hbm [shape: f32[16,128], index: 0, kind: input, shape index: {}]   ;;  %s261_s1 = inlined_call_operand.hbm [shape: f32[16,128], index: 1, kind: input, shape index: {}]   ;;  %s262_s2 = inlined_call_operand.hbm [shape: f32[1,3,8,128], index: 2, kind: output, shape index: {}]  }
   0x1   :  { %8 = vsyncpa [#allocation7], 0 }
   0x2   :  { %9 = vsyncpa [#allocation5], 0  ;;  %s195_s9 = smov [#allocation3]   ;;  %s123_s13 = scalar_lea.hbm %s260_s0, 256 }
   0x3   :  { %s19_s10 = sshll.u32 %s195_s9, 4  ;;  %p124_p0 = scmp.ne.s32.totalorder %s260_s0, %s123_s13  ;;  %s20_s10 = int_to_ptr.vmem [resolvable:$true] %s19_s10 }
   0x4   :  { %p127_p1 = scmp.lt.u32.totalorder %s123_s13, %s260_s0 }
   0x6   :  { %p129_p2 = pnand %p127_p1, %p124_p0 }
   0x8   :  { %132 = shalt.err (!%p129_p2)
}
   0x9   :  { %s133_s18 = scalar_lea.vmem %s20_s10, 256  ;;  %p138_p4 = scmp.lt.s32.totalorder %s20_s10, %s20_s10 }
   0xa   :  { %p134_p3 = scmp.ne.s32.totalorder %s20_s10, %s133_s18  ;;  %p139_p5 = scmp.lt.s32.totalorder %s133_s18, %s133_s18 }
   0xc   :  { %p140_p6 = por %p139_p5, %p138_p4 }
   0xe   :  { %p141_p7 = pnand %p140_p6, %p134_p3 }
  0x10   :  { %144 = shalt.err (!%p141_p7)
}
  0x11   :  { %s196_s19 = smov 128   ;;  %s197_s20 = smov 8  }
  0x12   :  { %25 = dma.hbm_to_vmem [thread:$0]  %s260_s0, 256, %s20_s10, [#allocation4], %s196_s19, %s196_s19, %s197_s20  }
  0x13   :  { %s198_s23 = smov [#allocation6]   ;;  %s145_s27 = scalar_lea.hbm %s261_s1, 256 }
  0x14   :  { %s35_s24 = sshll.u32 %s198_s23, 4  ;;  %p146_p8 = scmp.ne.s32.totalorder %s261_s1, %s145_s27  ;;  %s36_s24 = int_to_ptr.vmem [resolvable:$true] %s35_s24 }
  0x15   :  { %p149_p9 = scmp.lt.u32.totalorder %s145_s27, %s261_s1 }
  0x17   :  { %p151_p10 = pnand %p149_p9, %p146_p8 }
  0x19   :  { %154 = shalt.err (!%p151_p10)
}
  0x1a   :  { %s155_s4 = scalar_lea.vmem %s36_s24, 256  ;;  %p160_p12 = scmp.lt.s32.totalorder %s36_s24, %s36_s24 }
  0x1b   :  { %p156_p11 = scmp.ne.s32.totalorder %s36_s24, %s155_s4  ;;  %p161_p13 = scmp.lt.s32.totalorder %s155_s4, %s155_s4 }
  0x1d   :  { %p162_p0 = por %p161_p13, %p160_p12 }
  0x1f   :  { %p163_p1 = pnand %p162_p0, %p156_p11 }
  0x21   :  { %166 = shalt.err (!%p163_p1)
}
  0x22   :  { %41 = dma.hbm_to_vmem [thread:$0]  %s261_s1, 256, %s36_s24, [#allocation7], %s196_s19, %s196_s19, %s197_s20  }
  0x23   :  { %189 = dma.done.wait [#allocation4], 256  }
  0x24   :  { %190 = vsyncadd [#allocation4], 4294967040 }
  0x25   :  { %191 = dma.done.wait [#allocation7], 256  }
  0x26   :  { %192 = vsyncadd [#allocation7], 4294967040  ;;  %v59_v0 = vld [vmem:[#allocation3] sm:$0xff]  ;;  %v60_v1 = vld [vmem:[#allocation3 + $0x8] sm:$0xff]  ;;  %s199_s1 = smov [#allocation8]  }
  0x27   :  { %v61_v2 = vld [vmem:[#allocation6] sm:$0xff]  ;;  %v62_v3 = vld [vmem:[#allocation6 + $0x8] sm:$0xff]  ;;  %v63_v4 = vmul.f32 0.5, %v59_v0  ;;  %v64_v5 = vmul.f32 0.5, %v60_v1  ;;  %s101_s6 = sshll.u32 %s199_s1, 4  ;;  %s102_s6 = int_to_ptr.vmem [resolvable:$true] %s101_s6 }
  0x28   :  { %v84_v6 = vadd.f32 %v62_v3, %v61_v2  ;;  %s167_s7 = scalar_lea.vmem %s102_s6, 384  ;;  %p172_p3 = scmp.lt.s32.totalorder %s102_s6, %s102_s6 }
  0x29   :  { %119 = vtanh.f32 %v63_v4  ;;  %p168_p2 = scmp.ne.s32.totalorder %s102_s6, %s167_s7  ;;  %p173_p4 = scmp.lt.s32.totalorder %s167_s7, %s167_s7 }
  0x2a   :  { %121 = vtanh.f32 %v64_v5  ;;  %95 = vst [vmem:[#allocation8 + $0x10] sm:$0xff] %v84_v6 }
  0x2b   :  { %p174_p5 = por %p173_p4, %p172_p3 }
  0x2d   :  { %p175_p6 = pnand %p174_p5, %p168_p2 }
  0x33   :  { %v120_v7 = vpop.eup %119 }
  0x34   :  { %v122_v8 = vpop.eup %121  ;;  %v67_v9 = vadd.f32 1.0, %v120_v7 }
  0x35   :  { %v68_v10 = vadd.f32 1.0, %v122_v8 }
  0x36   :  { %v69_v11 = vmul.f32 0.5, %v67_v9 }
  0x37   :  { %v70_v12 = vmul.f32 0.5, %v68_v10 }
  0x38   :  { %v72_v13 = vmul.f32 %v69_v11, %v61_v2 }
  0x39   :  { %v73_v14 = vmul.f32 %v70_v12, %v62_v3  ;;  %v79_v15 = vadd.f32 %v70_v12, %v69_v11 }
  0x3b   :  { %v74_v16 = vadd.f32 %v73_v14, %v72_v13  ;;  %94 = vst [vmem:[#allocation8 + $0x8] sm:$0xff] %v79_v15 }
  0x3d   :  { %93 = vst [vmem:[#allocation8] sm:$0xff] %v74_v16 }
  0x3e   :  { %178 = shalt.err (!%p175_p6)
}
  0x3f   :  { %s179_s10 = scalar_lea.hbm %s262_s2, 384 }
  0x40   :  { %p180_p7 = scmp.ne.s32.totalorder %s262_s2, %s179_s10  ;;  %p183_p8 = scmp.lt.u32.totalorder %s179_s10, %s262_s2 }
  0x42   :  { %p185_p9 = pnand %p183_p8, %p180_p7 }
  0x44   :  { %188 = shalt.err (!%p185_p9)
}
  0x45   :  { %107 = dma.vmem_to_hbm [thread:$0]  %s102_s6, 384, %s262_s2, [#allocation5], %s196_s19, %s196_s19, %s197_s20  }
  0x46   :  { %193 = dma.done.wait [#allocation5], 384  }
  0x47   :  { %194 = vsyncadd [#allocation5], 4294966912 }
  0x48   :  { %111 = vsyncpa [#allocation4], 1 }
  0x49   :  { %112 = vsyncpa [#allocation7], 1 }
  0x4a   :  { %113 = vsyncpa [#allocation5], 1 }

</bundles_post_ra>
